<compile_context>
chip_gen: v7x
topology: tpu7x:2x2x1
jax: 0.10.0
libtpu: 0.0.40
codegen_flags: <defaults>
</compile_context>

<pallas_src>
import jax
import jax.numpy as jnp
from jax.experimental import pallas as pl
from jax.experimental.pallas import tpu as pltpu

IN_FEATURES = 28 * 28 * 1      # 784
H1, H2 = 64, 32
N_OUT = 10
N_OUT_PADDED = 128             # lane-dense output width (sliced back to 10 in wrapper)

MAX_TILE_B = 1024              # bf16 x tile: 1024*896(lane-padded)*2 ~ 1.75 MiB/buffer
MIN_TILE_B = 256               # mem-bound roofline already ~85% at a few-hundred rows
TARGET_STEPS = 4               # keep the pipeline fed (and >=2 steps for v7x's 2 TCs)
ALIGN = 16                     # bf16 sublane packing (also fine for f32)


def _cdiv(a, b):
    return (a + b - 1) // b


def _round_up(a, b):
    return _cdiv(a, b) * b


def _mlp_kernel(x_ref, w1_ref, b1_ref, w2_ref, b2_ref, w3_ref, b3_ref, o_ref):
    # x: (TILE_B, 784) bf16; w1: (784, 64) bf16; w2: (64, 32) bf16;
    # w3: (32, 128) bf16 (zero cols 10..127); biases: f32 (1, out).
    # All dots accumulate in f32 on the MXU; inter-layer activations are
    # re-quantized to bf16 so layers 2/3 also take the native bf16 MXU path.
    # TODO(synk): if a v5e bundle dump shows vreg spills / the single vst slot
    # binding at TILE_B=1024, sub-chunk the batch tile with an unrolled
    # lax.fori_loop so h1/h2 stay in vregs between the chained matmuls.
    h1 = jnp.dot(x_ref[...], w1_ref[...],
                 preferred_element_type=jnp.float32) + b1_ref[...]
    h1 = jnp.maximum(h1, 0.0).astype(jnp.bfloat16)
    h2 = jnp.dot(h1, w2_ref[...],
                 preferred_element_type=jnp.float32) + b2_ref[...]
    h2 = jnp.maximum(h2, 0.0).astype(jnp.bfloat16)
    o = jnp.dot(h2, w3_ref[...],
                preferred_element_type=jnp.float32) + b3_ref[...]
    o_ref[...] = o.astype(o_ref.dtype)


def prepare_params(params):
    """One-time conversion of PyTorch-style (out, in) f32 weights to kernel layout.

    Weights are transposed, zero-padded to the lane-dense output width and stored
    as bf16 (f32 MXU accumulation keeps the numerics at ~1e-2 relative error).
    Biases stay f32 (they are added to the f32 accumulator).  Done outside the
    per-call hot path so no transposes / pads / casts hit HBM per forward.
    """
    w1, b1, w2, b2, w3, b3 = params
    w1t = jnp.asarray(w1, jnp.float32).T.astype(jnp.bfloat16)            # (784, 64)
    w2t = jnp.asarray(w2, jnp.float32).T.astype(jnp.bfloat16)            # (64, 32)
    w3t = jnp.asarray(w3, jnp.float32).T                                 # (32, 10)
    w3p = (jnp.zeros((H2, N_OUT_PADDED), jnp.float32)
           .at[:, :N_OUT].set(w3t).astype(jnp.bfloat16))                 # (32, 128)
    b3p = jnp.zeros((1, N_OUT_PADDED), jnp.float32).at[:, :N_OUT].set(
        jnp.asarray(b3, jnp.float32).reshape(1, -1))                     # (1, 128)
    b1r = jnp.asarray(b1, jnp.float32).reshape(1, -1)                    # (1, 64)
    b2r = jnp.asarray(b2, jnp.float32).reshape(1, -1)                    # (1, 32)
    return (w1t, b1r, w2t, b2r, w3p, b3p)


def _pick_tiling(batch):
    """Balanced batch tiles: near-equal tile sizes, >=TARGET_STEPS steps when the
    batch is big enough, even step count where possible (v7x megacore)."""
    n_tiles = max(_cdiv(batch, MAX_TILE_B),                 # VMEM cap per tile
                  min(TARGET_STEPS, _cdiv(batch, MIN_TILE_B)))  # pipeline depth
    if n_tiles > 1 and n_tiles % 2 == 1:
        n_tiles += 1                                        # even split for 2 TCs
    tile_b = _round_up(_cdiv(batch, n_tiles), ALIGN)
    n_tiles = _cdiv(batch, tile_b)
    return tile_b, n_tiles


def mlp_forward(x_nchw, prepared_params, *, return_padded=False):
    """Run the MLP forward pass. x_nchw: (B, 1, 28, 28).

    Input is streamed to the kernel as bf16 (the reshape + cast + tail-pad fuse
    into one XLA pass; if the caller already holds bf16 data the cast is free).
    """
    w1t, b1r, w2t, b2r, w3p, b3p = prepared_params
    B = x_nchw.shape[0]

    # nn.Flatten(): flatten all dims except batch (row-major, same as torch).
    x2d = x_nchw.reshape(B, IN_FEATURES).astype(jnp.bfloat16)

    tile_b, n_tiles = _pick_tiling(B)
    Bp = n_tiles * tile_b
    if Bp != B:
        # Tail pad only (<= tile_b - 1 rows); fuses with the cast above.
        x2d = jnp.pad(x2d, ((0, Bp - B), (0, 0)))

    out = pl.pallas_call(
        _mlp_kernel,
        out_shape=jax.ShapeDtypeStruct((Bp, N_OUT_PADDED), jnp.bfloat16),
        grid=(n_tiles,),
        in_specs=[
            # x: streamed / double-buffered per batch tile
            pl.BlockSpec((tile_b, IN_FEATURES), lambda i: (i, 0)),
            # weights & biases: constant index map -> VMEM-resident across the grid
            pl.BlockSpec((IN_FEATURES, H1), lambda i: (0, 0)),
            pl.BlockSpec((1, H1), lambda i: (0, 0)),
            pl.BlockSpec((H1, H2), lambda i: (0, 0)),
            pl.BlockSpec((1, H2), lambda i: (0, 0)),
            pl.BlockSpec((H2, N_OUT_PADDED), lambda i: (0, 0)),
            pl.BlockSpec((1, N_OUT_PADDED), lambda i: (0, 0)),
        ],
        out_specs=pl.BlockSpec((tile_b, N_OUT_PADDED), lambda i: (i, 0)),
        compiler_params=pltpu.CompilerParams(
            dimension_semantics=("parallel",),   # batch axis shardable over v7x's 2 TCs
        ),
    )(x2d, w1t, b1r, w2t, b2r, w3p, b3p)

    if return_padded:
        return out                    # (Bp, 128) bf16: let consumers fuse the slice
    return out[:B, :N_OUT]


# Regularization helpers from the PyTorch module (plain JAX; no kernel needed).
def compute_l1_loss(w):
    return jnp.abs(w).sum()


def compute_l2_loss(w):
    return jnp.square(w).sum()


def init_params(key):
    """Deterministic init mimicking PyTorch Linear default (U[-1/sqrt(fan_in), ...])."""
    def linear_init(k, out_f, in_f):
        kw, kb = jax.random.split(k)
        bound = 1.0 / jnp.sqrt(jnp.float32(in_f))
        w = jax.random.uniform(kw, (out_f, in_f), jnp.float32, -bound, bound)
        b = jax.random.uniform(kb, (out_f,), jnp.float32, -bound, bound)
        return w, b

    k1, k2, k3 = jax.random.split(key, 3)
    w1, b1 = linear_init(k1, 64, IN_FEATURES)
    w2, b2 = linear_init(k2, 32, 64)
    w3, b3 = linear_init(k3, 10, 32)
    return (w1, b1, w2, b2, w3, b3)


if __name__ == "__main__":
    key = jax.random.PRNGKey(0)
    kp, kx = jax.random.split(key)
    params = init_params(kp)
    prepared = prepare_params(params)

    # Small batch, MNIST-shaped input implied by Linear(28*28*1, 64): (B, 1, 28, 28)
    x = jax.random.normal(kx, (2, 1, 28, 28), jnp.float32)

    out = mlp_forward(x, prepared)
    out = jax.block_until_ready(out)

    # Cross-check against a plain-JAX f32 reference of the same forward pass.
    # bf16 activations/weights trade exact f32 parity for bandwidth -> ~1e-2-level
    # relative differences, so the tolerance is loosened accordingly.
    w1, b1, w2, b2, w3, b3 = params
    xf = x.reshape(2, -1)
    ref = jnp.maximum(xf @ w1.T + b1, 0.0)
    ref = jnp.maximum(ref @ w2.T + b2, 0.0)
    ref = ref @ w3.T + b3

    assert out.shape == (2, 10)
    assert jnp.allclose(out.astype(jnp.float32), ref, atol=5e-2, rtol=5e-2)

    print("KERNEL_OK")
</pallas_src>

<mosaic_0001>
module attributes {stable_mosaic.version = 11 : i64} {
  func.func @_mlp_kernel(%arg0: i32, %arg1: memref<16x784xbf16, #tpu.memory_space<vmem>>, %arg2: memref<784x64xbf16, #tpu.memory_space<vmem>>, %arg3: memref<1x64xf32, #tpu.memory_space<vmem>>, %arg4: memref<64x32xbf16, #tpu.memory_space<vmem>>, %arg5: memref<1x32xf32, #tpu.memory_space<vmem>>, %arg6: memref<32x128xbf16, #tpu.memory_space<vmem>>, %arg7: memref<1x128xf32, #tpu.memory_space<vmem>>, %arg8: memref<16x128xbf16, #tpu.memory_space<vmem>>) attributes {dimension_semantics = [#tpu.dimension_semantics<parallel>], iteration_bounds = array<i64: 1>, scalar_prefetch = 0 : i64, scratch_operands = 0 : i64, tpu.core_type = #tpu.core_type<tc>, window_params = [{transform_indices = @transform_0, window_bounds = array<i64: 16, 784>}, {pipeline_mode = #tpu.pipeline_mode<synchronous>, transform_indices = @transform_1, window_bounds = array<i64: 784, 64>}, {pipeline_mode = #tpu.pipeline_mode<synchronous>, transform_indices = @transform_2, window_bounds = array<i64: 1, 64>}, {pipeline_mode = #tpu.pipeline_mode<synchronous>, transform_indices = @transform_3, window_bounds = array<i64: 64, 32>}, {pipeline_mode = #tpu.pipeline_mode<synchronous>, transform_indices = @transform_4, window_bounds = array<i64: 1, 32>}, {pipeline_mode = #tpu.pipeline_mode<synchronous>, transform_indices = @transform_5, window_bounds = array<i64: 32, 128>}, {pipeline_mode = #tpu.pipeline_mode<synchronous>, transform_indices = @transform_6, window_bounds = array<i64: 1, 128>}, {transform_indices = @transform_7, window_bounds = array<i64: 16, 128>}]} {
    %c0 = arith.constant 0 : index
    %c0_0 = arith.constant 0 : index
    %0 = vector.load %arg1[%c0, %c0_0] : memref<16x784xbf16, #tpu.memory_space<vmem>>, vector<16x784xbf16>
    %c0_1 = arith.constant 0 : index
    %c0_2 = arith.constant 0 : index
    %1 = vector.load %arg2[%c0_1, %c0_2] : memref<784x64xbf16, #tpu.memory_space<vmem>>, vector<784x64xbf16>
    %cst = arith.constant dense<0.000000e+00> : vector<16x64xf32>
    %2 = tpu.matmul %0, %1, %cst {dimension_numbers = #tpu.dot_dimension_numbers<[1], [0], [0], [1], [0, 0, 1, 1], [], []>} : vector<16x784xbf16>, vector<784x64xbf16>, vector<16x64xf32> -> vector<16x64xf32>
    %c0_3 = arith.constant 0 : index
    %c0_4 = arith.constant 0 : index
    %3 = vector.load %arg3[%c0_3, %c0_4] : memref<1x64xf32, #tpu.memory_space<vmem>>, vector<1x64xf32>
    %4 = vector.broadcast %3 : vector<1x64xf32> to vector<16x64xf32>
    %5 = arith.addf %2, %4 : vector<16x64xf32>
    %cst_5 = arith.constant 0.000000e+00 : f32
    %6 = vector.broadcast %cst_5 : f32 to vector<16x64xf32>
    %7 = arith.maximumf %5, %6 : vector<16x64xf32>
    %8 = arith.truncf %7 : vector<16x64xf32> to vector<16x64xbf16>
    %c0_6 = arith.constant 0 : index
    %c0_7 = arith.constant 0 : index
    %9 = vector.load %arg4[%c0_6, %c0_7] : memref<64x32xbf16, #tpu.memory_space<vmem>>, vector<64x32xbf16>
    %cst_8 = arith.constant dense<0.000000e+00> : vector<16x32xf32>
    %10 = tpu.matmul %8, %9, %cst_8 {dimension_numbers = #tpu.dot_dimension_numbers<[1], [0], [0], [1], [0, 0, 1, 1], [], []>} : vector<16x64xbf16>, vector<64x32xbf16>, vector<16x32xf32> -> vector<16x32xf32>
    %c0_9 = arith.constant 0 : index
    %c0_10 = arith.constant 0 : index
    %11 = vector.load %arg5[%c0_9, %c0_10] : memref<1x32xf32, #tpu.memory_space<vmem>>, vector<1x32xf32>
    %12 = vector.broadcast %11 : vector<1x32xf32> to vector<16x32xf32>
    %13 = arith.addf %10, %12 : vector<16x32xf32>
    %cst_11 = arith.constant 0.000000e+00 : f32
    %14 = vector.broadcast %cst_11 : f32 to vector<16x32xf32>
    %15 = arith.maximumf %13, %14 : vector<16x32xf32>
    %16 = arith.truncf %15 : vector<16x32xf32> to vector<16x32xbf16>
    %c0_12 = arith.constant 0 : index
    %c0_13 = arith.constant 0 : index
    %17 = vector.load %arg6[%c0_12, %c0_13] : memref<32x128xbf16, #tpu.memory_space<vmem>>, vector<32x128xbf16>
    %cst_14 = arith.constant dense<0.000000e+00> : vector<16x128xf32>
    %18 = tpu.matmul %16, %17, %cst_14 {dimension_numbers = #tpu.dot_dimension_numbers<[1], [0], [0], [1], [0, 0, 1, 1], [], []>} : vector<16x32xbf16>, vector<32x128xbf16>, vector<16x128xf32> -> vector<16x128xf32>
    %c0_15 = arith.constant 0 : index
    %c0_16 = arith.constant 0 : index
    %19 = vector.load %arg7[%c0_15, %c0_16] : memref<1x128xf32, #tpu.memory_space<vmem>>, vector<1x128xf32>
    %20 = vector.broadcast %19 : vector<1x128xf32> to vector<16x128xf32>
    %21 = arith.addf %18, %20 : vector<16x128xf32>
    %22 = arith.truncf %21 : vector<16x128xf32> to vector<16x128xbf16>
    %c0_17 = arith.constant 0 : index
    %c0_18 = arith.constant 0 : index
    %23 = vector.load %arg8[%c0_17, %c0_18] : memref<16x128xbf16, #tpu.memory_space<vmem>>, vector<16x128xbf16>
    tpu.vector_store %arg8[%c0_17, %c0_18], %22 {strides = array<i32>} : memref<16x128xbf16, #tpu.memory_space<vmem>>, vector<16x128xbf16>,
    return
  }
  func.func @transform_0(%arg0: i32) -> (i32, i32) {
    %c0_i32 = arith.constant 0 : i32
    %c0_i32_0 = arith.constant 0 : i32
    return %arg0, %c0_i32 : i32, i32
  }
  func.func @transform_1(%arg0: i32) -> (i32, i32) {
    %c0_i32 = arith.constant 0 : i32
    %c0_i32_0 = arith.constant 0 : i32
    %c0_i32_1 = arith.constant 0 : i32
    return %c0_i32, %c0_i32_0 : i32, i32
  }
  func.func @transform_2(%arg0: i32) -> (i32, i32) {
    %c0_i32 = arith.constant 0 : i32
    %c0_i32_0 = arith.constant 0 : i32
    %c0_i32_1 = arith.constant 0 : i32
    return %c0_i32, %c0_i32_0 : i32, i32
  }
  func.func @transform_3(%arg0: i32) -> (i32, i32) {
    %c0_i32 = arith.constant 0 : i32
    %c0_i32_0 = arith.constant 0 : i32
    %c0_i32_1 = arith.constant 0 : i32
    return %c0_i32, %c0_i32_0 : i32, i32
  }
  func.func @transform_4(%arg0: i32) -> (i32, i32) {
    %c0_i32 = arith.constant 0 : i32
    %c0_i32_0 = arith.constant 0 : i32
    %c0_i32_1 = arith.constant 0 : i32
    return %c0_i32, %c0_i32_0 : i32, i32
  }
  func.func @transform_5(%arg0: i32) -> (i32, i32) {
    %c0_i32 = arith.constant 0 : i32
    %c0_i32_0 = arith.constant 0 : i32
    %c0_i32_1 = arith.constant 0 : i32
    return %c0_i32, %c0_i32_0 : i32, i32
  }
  func.func @transform_6(%arg0: i32) -> (i32, i32) {
    %c0_i32 = arith.constant 0 : i32
    %c0_i32_0 = arith.constant 0 : i32
    %c0_i32_1 = arith.constant 0 : i32
    return %c0_i32, %c0_i32_0 : i32, i32
  }
  func.func @transform_7(%arg0: i32) -> (i32, i32) {
    %c0_i32 = arith.constant 0 : i32
    %c0_i32_0 = arith.constant 0 : i32
    return %arg0, %c0_i32 : i32, i32
  }
}

</mosaic_0001>

<bundles_post_ra>
// kernel: tpu_custom_call.1
= control target key start
LH: loop header
LB: loop body
LE: loop exit
PB: predicated region body
PF: predicated region fallthrough
CT: control target
= control target key end

     0   :  { %v1095_v38 = vmov 0.0   ;;  %vm1096_vm0 = vmmov 0   ;;  %vm470_vm1 = vcmask 130048   ;;  %s1360_s0 = inlined_call_operand.vmem [shape: bf16[16,784], index: 0, kind: input, shape index: {}]   ;;  %s1361_s1 = inlined_call_operand.vmem [shape: bf16[784,64], index: 1, kind: input, shape index: {}]   ;;  %s1362_s2 = inlined_call_operand.vmem [shape: f32[1,64], index: 2, kind: input, shape index: {}]   ;;  %s1363_s3 = inlined_call_operand.vmem [shape: bf16[64,32], index: 3, kind: input, shape index: {}]   ;;  %s1364_s4 = inlined_call_operand.vmem [shape: f32[1,32], index: 4, kind: input, shape index: {}]   ;;  %s1365_s5 = inlined_call_operand.vmem [shape: bf16[32,128], index: 5, kind: input, shape index: {}]   ;;  %s1366_s6 = inlined_call_operand.vmem [shape: f32[1,128], index: 6, kind: input, shape index: {}]   ;;  %s1367_s7 = inlined_call_operand.hbm [shape: bf16[16,128], index: 7, kind: output, shape index: {}]  }
   0x1   :  { %v1006_v0 = vld [vmem:[%s1361_s1 + $0x40] sm:$0xff]   ;;  %v1010_v4 = vld [vmem:[%s1361_s1 + $0x48] sm:$0xff]   ;;  %v1014_v8 = vld [vmem:[%s1361_s1 + $0x50] sm:$0xff]  }
   0x2   :  { %v1007_v1 = vld [vmem:[%s1361_s1] sm:$0xff]   ;;  %899 = vmatprep.subr.bf16.mxu0 %v1006_v0  ;;  %v1011_v5 = vld [vmem:[%s1361_s1 + $0x8] sm:$0xff]   ;;  %v1015_v9 = vld [vmem:[%s1361_s1 + $0x10] sm:$0xff]  }
   0x3   :  { %v1008_v2 = vld [vmem:[%s1361_s1 + $0xc0] sm:$0xff]   ;;  %900 = vmatpush3.bf16.msra.mxu0 %v1007_v1  ;;  %v1012_v6 = vld [vmem:[%s1361_s1 + $0xc8] sm:$0xff]   ;;  %v1016_v10 = vld [vmem:[%s1361_s1 + $0xd0] sm:$0xff]  }
   0x4   :  { %v1009_v3 = vld [vmem:[%s1361_s1 + $0x80] sm:$0xff]   ;;  %921 = vmatprep.subr.bf16.mxu1 %v1008_v2  ;;  %901 = vmatprep.subr.bf16.mxu0 %v1010_v4  ;;  %v1013_v7 = vld [vmem:[%s1361_s1 + $0x88] sm:$0xff]   ;;  %v1017_v11 = vld [vmem:[%s1361_s1 + $0x90] sm:$0xff]  }
   0x5   :  { %922 = vmatpush3.bf16.msra.mxu1 %v1009_v3  ;;  %v1018_v12 = vld [vmem:[%s1361_s1 + $0x58] sm:$0xff]   ;;  %v1022_v16 = vld [vmem:[%s1361_s1 + $0x60] sm:$0xff]   ;;  %v1026_v20 = vld [vmem:[%s1361_s1 + $0x68] sm:$0xff]  }
   0x6   :  { %923 = vmatprep.subr.bf16.mxu1 %v1012_v6  ;;  %v1019_v13 = vld [vmem:[%s1361_s1 + $0x18] sm:$0xff]   ;;  %v1023_v17 = vld [vmem:[%s1361_s1 + $0x20] sm:$0xff]   ;;  %v1027_v21 = vld [vmem:[%s1361_s1 + $0x28] sm:$0xff]  }
   0x7   :  { %902 = vmatpush3.bf16.msra.mxu0 %v1011_v5  ;;  %v1020_v14 = vld [vmem:[%s1361_s1 + $0xd8] sm:$0xff]   ;;  %v1024_v18 = vld [vmem:[%s1361_s1 + $0xe0] sm:$0xff]   ;;  %v1028_v22 = vld [vmem:[%s1361_s1 + $0xe8] sm:$0xff]  }
   0x8   :  { %903 = vmatprep.subr.bf16.mxu0 %v1014_v8  ;;  %v1021_v15 = vld [vmem:[%s1361_s1 + $0x98] sm:$0xff]   ;;  %v1025_v19 = vld [vmem:[%s1361_s1 + $0xa0] sm:$0xff]   ;;  %v1029_v23 = vld [vmem:[%s1361_s1 + $0xa8] sm:$0xff]  }
   0x9   :  { %924 = vmatpush3.bf16.msra.mxu1 %v1013_v7  ;;  %v1030_v24 = vld [vmem:[%s1361_s1 + $0x70] sm:$0xff]   ;;  %v1034_v28 = vld [vmem:[%s1361_s1 + $0x78] sm:$0xff]   ;;  %v1039_v32 = vld [vmem:[%s1360_s0 + $0x4] ss:$28 sps:$4 sm:$0xff]  }
   0xa   :  { %925 = vmatprep.subr.bf16.mxu1 %v1016_v10  ;;  %v1031_v25 = vld [vmem:[%s1361_s1 + $0x30] sm:$0xff]   ;;  %v1035_v29 = vld [vmem:[%s1361_s1 + $0x38] sm:$0xff]   ;;  %506 = vmatprep.mubr.bf16.mxu0 %v1039_v32  ;;  %v1041_v34 = vld [vmem:[%s1361_s1 + $0x140] sm:$0xff]  }
   0xb   :  { %904 = vmatpush3.bf16.msra.mxu0 %v1015_v9  ;;  %v1032_v26 = vld [vmem:[%s1361_s1 + $0xf0] sm:$0xff]   ;;  %v1036_v30 = vld [vmem:[%s1361_s1 + $0xf8] sm:$0xff]   ;;  %v1042_v35 = vld [vmem:[%s1360_s0 + $0x8] ss:$28 sps:$4 sm:$0xff]  }
   0xc   :  { %905 = vmatprep.subr.bf16.mxu0 %v1018_v12  ;;  %v1033_v27 = vld [vmem:[%s1361_s1 + $0xb0] sm:$0xff]   ;;  %v1037_v31 = vld [vmem:[%s1360_s0] ss:$28 sps:$4 sm:$0xff]   ;;  %v1044_v36 = vld [vmem:[%s1360_s0 + $0xc] ss:$28 sps:$4 sm:$0xff]  }
   0xd   :  { %926 = vmatpush3.bf16.msra.mxu1 %v1017_v11  ;;  %v1040_v33 = vld [vmem:[%s1361_s1 + $0xb8] sm:$0xff]   ;;  %v1045_v37 = vld [vmem:[%s1361_s1 + $0x100] sm:$0xff]   ;;  %547 = vmatprep.mubr.bf16.mxu1 %v1044_v36  ;;  %v1046_v39 = vld [vmem:[%s1361_s1 + $0x148] sm:$0xff]  }
   0xe   :  { %927 = vmatprep.subr.bf16.mxu1 %v1020_v14  ;;  %v1047_v40 = vld [vmem:[%s1361_s1 + $0x108] sm:$0xff]   ;;  %v1048_v41 = vld [vmem:[%s1361_s1 + $0x150] sm:$0xff]   ;;  %v1050_v43 = vld [vmem:[%s1361_s1 + $0x158] sm:$0xff]  }
   0xf   :  { %906 = vmatpush3.bf16.msra.mxu0 %v1019_v13  ;;  %v1049_v42 = vld [vmem:[%s1361_s1 + $0x110] sm:$0xff]   ;;  %v1051_v44 = vld [vmem:[%s1361_s1 + $0x118] sm:$0xff]   ;;  %v1052_v45 = vld [vmem:[%s1361_s1 + $0x160] sm:$0xff]  }
  0x10   :  { %907 = vmatprep.subr.bf16.mxu0 %v1022_v16  ;;  %v1053_v46 = vld [vmem:[%s1361_s1 + $0x120] sm:$0xff]   ;;  %v1054_v47 = vld [vmem:[%s1361_s1 + $0x168] sm:$0xff]   ;;  %v1063_v50 = vld [vmem:[%s1360_s0 + $0x14] ss:$28 sps:$4 sm:$0xff]  }
  0x11   :  { %928 = vmatpush3.bf16.msra.mxu1 %v1021_v15  ;;  %v1060_v48 = vld [vmem:[%s1361_s1 + $0x180] sm:$0xff]   ;;  %v1055_v49 = vld [vmem:[%s1361_s1 + $0x128] sm:$0xff]   ;;  %v1056_v51 = vld [vmem:[%s1361_s1 + $0x170] sm:$0xff]  }
  0x12   :  { %929 = vmatprep.subr.bf16.mxu1 %v1024_v18  ;;  %v1064_v52 = vld [vmem:[%s1360_s0 + $0x18] ss:$28 sps:$4 sm:$0xff]  }
  0x13   :  { %908 = vmatpush3.bf16.msra.mxu0 %v1023_v17  ;;  %v1057_v53 = vld [vmem:[%s1361_s1 + $0x130] sm:$0xff]  }
  0x14   :  { %909 = vmatprep.subr.bf16.mxu0 %v1026_v20 }
  0x15   :  { %930 = vmatpush3.bf16.msra.mxu1 %v1025_v19 }
  0x16   :  { %931 = vmatprep.subr.bf16.mxu1 %v1028_v22 }
  0x17   :  { %910 = vmatpush3.bf16.msra.mxu0 %v1027_v21 }
  0x18   :  { %911 = vmatprep.subr.bf16.mxu0 %v1030_v24 }
  0x19   :  { %932 = vmatpush3.bf16.msra.mxu1 %v1029_v23 }
  0x1a   :  { %933 = vmatprep.subr.bf16.mxu1 %v1032_v26 }
  0x1b   :  { %912 = vmatpush3.bf16.msra.mxu0 %v1031_v25 }
  0x1c   :  { %913 = vmatprep.subr.bf16.mxu0 %v1034_v28 }
  0x1d   :  { %934 = vmatpush3.bf16.msra.mxu1 %v1033_v27 }
  0x1e   :  { %935 = vmatprep.subr.bf16.mxu1 %v1036_v30 }
  0x1f   :  { %914 = vmatpush3.bf16.msra.mxu0 %v1035_v29 }
  0x20   :  { %943 = vmatprep.subr.bf16.mxu0 %v1041_v34 }
  0x21   :  { %936 = vmatpush3.bf16.msra.mxu1 %v1040_v33 }
  0x22   :  { %507 = vmatmul.mubr.bf16.vlgmr.msra.gmra.mrb[0].mxu0 %v1037_v31  ;;  %975 = vmatprep.subr.bf16.mxu1 %v1095_v38 }
  0x23   :  { %944 = vmatpush3.bf16.msra.mxu0 %v1045_v37  ;;  %588 = vmatprep.mubr.bf16.mxu0 %v1063_v50 }
  0x24   :  { %548 = vmatmul.mubr.bf16.vlgmr.msra.gmra.mrb[0].mxu1 %v1042_v35  ;;  %945 = vmatprep.subr.bf16.mxu0 %v1046_v39 }
  0x25   :  { %977 = vmatprep.mubr.msk.bf16.mxu1 %vm1096_vm0, %v1095_v38  ;;  %976 = vmatpush3.bf16.msra.mxu1 %v1060_v48 }
  0x26   :  { %981 = vmatprep.subr.bf16.mxu1 %v1095_v38 }
  0x27   :  { %946 = vmatpush3.bf16.msra.mxu0 %v1047_v40 }
  0x28   :  { %947 = vmatprep.subr.bf16.mxu0 %v1048_v41 }
  0x2b   :  { %948 = vmatpush3.bf16.msra.mxu0 %v1049_v42 }
  0x2c   :  { %949 = vmatprep.subr.bf16.mxu0 %v1050_v43  ;;  %978 = vmatmul.mubr.msk.bf16.vlgmr.msra.gmra.mrb[4].mxu1 %vm470_vm1, %v1064_v52 }
  0x2d   :  { %989 = vmatprep.mubr.msk.bf16.mxu1 %vm1096_vm0, %v1095_v38 }
  0x2f   :  { %950 = vmatpush3.bf16.msra.mxu0 %v1051_v44 }
  0x30   :  { %951 = vmatprep.subr.bf16.mxu0 %v1052_v45 }
  0x33   :  { %952 = vmatpush3.bf16.msra.mxu0 %v1053_v46 }
  0x34   :  { %953 = vmatprep.subr.bf16.mxu0 %v1054_v47 }
  0x37   :  { %954 = vmatpush3.bf16.msra.mxu0 %v1055_v49 }
  0x38   :  { %12 = vsyncpa [#allocation3], 0  ;;  %955 = vmatprep.subr.bf16.mxu0 %v1056_v51  ;;  %v1058_v54 = vld [vmem:[%s1361_s1 + $0x178] sm:$0xff]   ;;  %v1061_v56 = vld [vmem:[%s1360_s0 + $0x10] ss:$28 sps:$4 sm:$0xff]   ;;  %vm680_vm2 = vcmask 523264  }
  0x39   :  { %v1059_v55 = vld [vmem:[%s1361_s1 + $0x138] sm:$0xff]   ;;  %v1065_v57 = vld [vmem:[%s1363_s3] sm:$0xff]   ;;  %v1066_v58 = vld [vmem:[%s1363_s3 + $0x8] sm:$0xff]   ;;  %vm751_vm3 = vcmask 261120  }
  0x3a   :  { %982 = vmatpush3.bf16.msra.mxu1 %v1065_v57  ;;  %v1067_v59 = vld [vmem:[%s1363_s3 + $0x10] sm:$0xff]   ;;  %v1068_v60 = vld [vmem:[%s1363_s3 + $0x18] sm:$0xff]   ;;  %v822_v62 = vld [vmem:[%s1362_s2] ss:$0 sm:$0xff] }
  0x3b   :  { %956 = vmatpush3.bf16.msra.mxu0 %v1057_v53  ;;  %983 = vmatprep.subr.bf16.mxu1 %v1095_v38  ;;  %v1069_v31 = vld [vmem:[%s1365_s5] sm:$0xff]   ;;  %v1070_v32 = vld [vmem:[%s1365_s5 + $0x8] sm:$0xff]   ;;  %s1097_s5 = smov [#allocation2]  }
  0x3c   :  { %957 = vmatprep.subr.bf16.mxu0 %v1058_v54  ;;  %v880_v33 = vld [vmem:[%s1364_s4] ss:$0 sm:$0xff]  ;;  %s811_s12 = sshll.u32 %s1097_s5, 4  ;;  %s812_s12 = int_to_ptr.vmem [resolvable:$true] %s811_s12 }
  0x3d   :  { %s1071_s4 = scalar_lea.vmem %s812_s12, 128  ;;  %p1076_p1 = scmp.lt.s32.totalorder %s812_s12, %s812_s12 }
  0x3e   :  { %984 = vmatpush3.bf16.msra.mxu1 %v1066_v58  ;;  %p1072_p0 = scmp.ne.s32.totalorder %s812_s12, %s1071_s4  ;;  %p1077_p2 = scmp.lt.s32.totalorder %s1071_s4, %s1071_s4 }
  0x3f   :  { %958 = vmatpush3.bf16.msra.mxu0 %v1059_v55  ;;  %985 = vmatprep.subr.bf16.mxu1 %v1095_v38 }
  0x40   :  { %p1078_p3 = por %p1077_p2, %p1076_p1 }
  0x42   :  { %589 = vmatmul.mubr.bf16.vlgmr.msra.gmra.mrb[4].mxu0 %v1061_v56  ;;  %986 = vmatpush3.bf16.msra.mxu1 %v1067_v59  ;;  %p1079_p4 = pnand %p1078_p3, %p1072_p0 }
  0x43   :  { %987 = vmatprep.subr.bf16.mxu1 %v1095_v38 }
  0x46   :  { %988 = vmatpush3.bf16.msra.mxu1 %v1068_v60 }
  0x47   :  { %993 = vmatprep.subr.bf16.mxu1 %v1095_v38 }
  0xf5   :  { %v915_v61 = vpop.f32.mrb[0].mxu0 }
  0xf6   :  { %v916_v63 = vpop.f32.mrb[1].mxu0 }
  0xf7   :  { %v917_v0 = vadd.f32 %v916_v63, %v915_v61  ;;  %v918_v1 = vpop.f32.mrb[2].mxu0  ;;  %v937_v2 = vpop.f32.mrb[0].mxu1 }
  0xf8   :  { %v919_v3 = vpop.f32.mrb[3].mxu0  ;;  %v938_v6 = vpop.f32.mrb[1].mxu1 }
  0xf9   :  { %v509_v4 = vadd.f32 %v917_v0, %v822_v62  ;;  %v920_v5 = vadd.f32 %v919_v3, %v918_v1  ;;  %v939_v7 = vadd.f32 %v938_v6, %v937_v2  ;;  %v940_v8 = vpop.f32.mrb[2].mxu1 }
  0xfa   :  { %v941_v10 = vpop.f32.mrb[3].mxu1 }
  0xfb   :  { %v512_v9 = vadd.f32 %v920_v5, %v822_v62  ;;  %v550_v11 = vadd.f32 %v939_v7, %v509_v4  ;;  %v942_v12 = vadd.f32 %v941_v10, %v940_v8 }
  0xfd   :  { %v553_v13 = vadd.f32 %v942_v12, %v512_v9 }
  0xff   :  { %v631_v14 = vpop.f32.mrb[4].mxu1 }
 0x100   :  { %v979_v15 = vpop.f32.mrb[5].mxu1 }
 0x101   :  { %v634_v16 = vpop.f32.mrb[6].mxu1 }
 0x102   :  { %v980_v17 = vpop.f32.mrb[7].mxu1 }
 0x115   :  { %v959_v18 = vpop.f32.mrb[4].mxu0 }
 0x116   :  { %v960_v19 = vpop.f32.mrb[5].mxu0 }
 0x117   :  { %v961_v20 = vadd.f32 %v960_v19, %v959_v18  ;;  %v962_v21 = vpop.f32.mrb[6].mxu0 }
 0x118   :  { %v963_v22 = vpop.f32.mrb[7].mxu0 }
 0x119   :  { %v591_v23 = vadd.f32 %v961_v20, %v550_v11  ;;  %v964_v24 = vadd.f32 %v963_v22, %v962_v21 }
 0x11b   :  { %v632_v25 = vadd.f32 %v631_v14, %v591_v23  ;;  %v594_v26 = vadd.f32 %v964_v24, %v553_v13 }
 0x11d   :  { %v635_v27 = vadd.f32 %v634_v16, %v594_v26  ;;  %v638_v28 = vmax.f32 %v632_v25, 0.0 }
 0x11f   :  { %v639_v29 = vmax.f32 %v635_v27, 0.0 }
 0x121   :  { %v640_v30 = vpack.c.bf16 %v639_v29, %v638_v28 }
 0x123   :  { %990 = vmatmul.mubr.msk.bf16.vlgmr.msra.gmra.mrb[8].mxu1 %vm680_vm2, %v640_v30 }
 0x124   :  { %997 = vmatprep.mubr.msk.bf16.mxu1 %vm1096_vm0, %v1095_v38  ;;  %994 = vmatpush3.bf16.msra.mxu1 %v1069_v31 }
 0x125   :  { %995 = vmatprep.subr.bf16.mxu1 %v1095_v38  ;;  %v886_v38 = vld [vmem:[%s1366_s6] ss:$0 sm:$0xff] }
 0x128   :  { %996 = vmatpush3.bf16.msra.mxu1 %v1070_v32 }
 0x1f6   :  { %v718_v34 = vpop.f32.mrb[8].mxu1 }
 0x1f7   :  { %v719_v35 = vadd.f32 %v880_v33, %v718_v34  ;;  %v991_v36 = vpop.f32.mrb[9].mxu1 }
 0x1f8   :  { %v721_v37 = vpop.f32.mrb[10].mxu1 }
 0x1f9   :  { %v722_v39 = vadd.f32 %v880_v33, %v721_v37  ;;  %v992_v40 = vpop.f32.mrb[11].mxu1  ;;  %v725_v41 = vmax.f32 %v719_v35, 0.0 }
 0x1fb   :  { %v726_v42 = vmax.f32 %v722_v39, 0.0 }
 0x1fd   :  { %v727_v43 = vpack.c.bf16 %v726_v42, %v725_v41 }
 0x1ff   :  { %998 = vmatmul.mubr.msk.bf16.vlgmr.msra.gmra.mrb[12].mxu1 %vm751_vm3, %v727_v43 }
 0x2d2   :  { %v789_v44 = vpop.f32.mrb[12].mxu1 }
 0x2d3   :  { %v999_v45 = vpop.f32.mrb[13].mxu1  ;;  %v790_v47 = vadd.f32 %v886_v38, %v789_v44 }
 0x2d4   :  { %v792_v46 = vpop.f32.mrb[14].mxu1 }
 0x2d5   :  { %v793_v48 = vadd.f32 %v886_v38, %v792_v46  ;;  %v1000_v49 = vpop.f32.mrb[15].mxu1 }
 0x2d7   :  { %v897_v50 = vpack.c.bf16 %v793_v48, %v790_v47 }
 0x2d9   :  { %898 = vst [vmem:[#allocation2] sm:$0xff] %v897_v50  }
 0x2da   :  { %1082 = shalt.err (!%p1079_p4)
}
 0x2db   :  { %s1083_s14 = scalar_lea.hbm %s1367_s7, 128 }
 0x2dc   :  { %p1084_p5 = scmp.ne.s32.totalorder %s1367_s7, %s1083_s14  ;;  %p1087_p6 = scmp.lt.u32.totalorder %s1083_s14, %s1367_s7 }
 0x2de   :  { %p1089_p7 = pnand %p1087_p6, %p1084_p5 }
 0x2e0   :  { %1092 = shalt.err (!%p1089_p7)
}
 0x2e1   :  { %s1098_s19 = smov 64   ;;  %s1099_s20 = smov 4  }
 0x2e2   :  { %817 = dma.vmem_to_hbm [thread:$0]  %s812_s12, 128, %s1367_s7, [#allocation3], %s1098_s19, %s1098_s19, %s1099_s20  }
 0x2e3   :  { %1093 = dma.done.wait [#allocation3], 128  }
 0x2e4   :  { %1094 = vsyncadd [#allocation3], 4294967168 }
 0x2e5   :  { %821 = vsyncpa [#allocation3], 1 }

</bundles_post_ra>
